<compile_context>
chip_gen: v5e
topology: v5e:2x2
jax: 0.10.0
libtpu: 0.0.40
codegen_flags: <defaults>
</compile_context>

<pallas_src>
import functools
import math

import jax
import jax.numpy as jnp
from jax.experimental import pallas as pl
from jax.experimental.pallas import tpu as pltpu

_GELU_C = math.sqrt(2.0 / math.pi)
_TM = 512    # row tile (sweep 512-1024 on v5e/v6e); clipped to M for small inputs
_TN = 2048   # lane tile for large-N linears (lm head); multiple of 128


@functools.lru_cache(maxsize=None)
def _vmem_limit_bytes():
    """Scoped-VMEM limit ~7/8 of physical: ~56 MiB on v7x, ~112 MiB on v5e/v6e."""
    cap = 128 * 1024 * 1024
    try:
        cap = int(getattr(pltpu.get_tpu_info(), "vmem_capacity_bytes", cap))
    except Exception:
        pass
    return int(min(max(cap * 7 // 8, 32 * 1024 * 1024), 112 * 1024 * 1024))


def _compiler_params(semantics):
    return pltpu.CompilerParams(dimension_semantics=semantics,
                                vmem_limit_bytes=_vmem_limit_bytes())


def _layernorm_f32(x_f32, scale_f32, shift_f32, eps):
    mean = jnp.mean(x_f32, axis=-1, keepdims=True)
    var = jnp.mean((x_f32 - mean) ** 2, axis=-1, keepdims=True)   # unbiased=False
    return (x_f32 - mean) * jax.lax.rsqrt(var + eps) * scale_f32 + shift_f32


# ------------------- Generic [LN ->] linear [+bias] [+residual] -------------------
def _linear_kernel(*refs, has_ln, has_bias, has_res, eps):
    it = iter(refs)
    x_ref = next(it)
    x = x_ref[...]
    if has_ln:
        ls = next(it)[...].astype(jnp.float32)
        sh = next(it)[...].astype(jnp.float32)
        x = _layernorm_f32(x.astype(jnp.float32), ls, sh, eps).astype(x_ref.dtype)
    w_ref = next(it)
    # Native-dtype MXU operands (bf16-ready), f32 accumulation.
    y = jnp.dot(x, w_ref[...], preferred_element_type=jnp.float32)
    if has_bias:
        y = y + next(it)[...].astype(jnp.float32)
    if has_res:
        y = y + next(it)[...].astype(jnp.float32)
    o_ref = next(it)
    o_ref[...] = y.astype(o_ref.dtype)


def linear_pallas(x2, w, bias=None, residual=None, ln=None, *,
                  eps=1e-5, tm=_TM, tn=_TN):
    """y = [LayerNorm](x2) @ w [+ bias] [+ residual]; tiled over rows and (large) N."""
    M, K = x2.shape
    N = w.shape[1]
    tm = min(tm, M)
    tn = N if N <= tn else tn
    grid = (pl.cdiv(M, tm), pl.cdiv(N, tn))

    in_specs = [pl.BlockSpec((tm, K), lambda i, j: (i, 0))]
    operands = [x2]
    if ln is not None:
        in_specs += [pl.BlockSpec((1, K), lambda i, j: (0, 0)),
                     pl.BlockSpec((1, K), lambda i, j: (0, 0))]
        operands += [ln[0].reshape(1, K), ln[1].reshape(1, K)]
    # TODO(synk): when weights overflow the VMEM budget even after N-tiling, cast them to
    #             bf16 or single-buffer the constant-index specs (pipeline_mode=pl.Buffered(1)).
    in_specs.append(pl.BlockSpec((K, tn), lambda i, j: (0, j)))
    operands.append(w)
    if bias is not None:
        in_specs.append(pl.BlockSpec((1, tn), lambda i, j: (0, j)))
        operands.append(bias.reshape(1, N))
    if residual is not None:
        in_specs.append(pl.BlockSpec((tm, tn), lambda i, j: (i, j)))
        operands.append(residual)

    itemsize = x2.dtype.itemsize
    bytes_accessed = (M * K + K * N + M * N) * itemsize
    if bias is not None:
        bytes_accessed += N * itemsize
    if residual is not None:
        bytes_accessed += M * N * itemsize

    kernel = functools.partial(_linear_kernel, has_ln=ln is not None,
                               has_bias=bias is not None,
                               has_res=residual is not None, eps=eps)
    return pl.pallas_call(
        kernel,
        out_shape=jax.ShapeDtypeStruct((M, N), x2.dtype),
        grid=grid,
        in_specs=in_specs,
        out_specs=pl.BlockSpec((tm, tn), lambda i, j: (i, j)),
        compiler_params=_compiler_params(("parallel", "parallel")),
        cost_estimate=pl.CostEstimate(flops=2 * M * K * N, transcendentals=0,
                                      bytes_accessed=int(bytes_accessed)),
    )(*operands)


# --------------------- Fused LN2 -> Linear -> GELU -> Linear -> +res ---------------------
def _ffn_kernel(x_ref, ls_ref, sh_ref, w1_ref, b1_ref, w2_ref, b2_ref, o_ref, *, eps):
    xf = x_ref[...].astype(jnp.float32)                       # residual (pre-LN) kept in f32
    xn = _layernorm_f32(xf, ls_ref[...].astype(jnp.float32),
                        sh_ref[...].astype(jnp.float32), eps)
    h = jnp.dot(xn.astype(w1_ref.dtype), w1_ref[...], preferred_element_type=jnp.float32)
    h = h + b1_ref[...].astype(jnp.float32)
    h2 = h * h                                                # GELU (tanh approx), one fewer mul
    g = 0.5 * h * (1.0 + jnp.tanh(_GELU_C * h * (1.0 + 0.044715 * h2)))
    y = jnp.dot(g.astype(w2_ref.dtype), w2_ref[...], preferred_element_type=jnp.float32)
    y = y + b2_ref[...].astype(jnp.float32) + xf              # fused residual add
    o_ref[...] = y.astype(o_ref.dtype)                        # dropout: eval-mode identity


def feedforward_pallas(x2, ln_scale, ln_shift, w1, b1, w2, b2, *, eps=1e-5, tm=_TM):
    M, E = x2.shape
    H = w1.shape[1]
    tm = min(tm, M)
    itemsize = x2.dtype.itemsize
    # TODO(synk): for GPT-scale E on v7x (w1+w2 f32 near the 56 MiB limit) stream H with a
    #             second "arbitrary" grid axis + f32 accumulator, or cast weights to bf16.
    return pl.pallas_call(
        functools.partial(_ffn_kernel, eps=eps),
        out_shape=jax.ShapeDtypeStruct((M, E), x2.dtype),
        grid=(pl.cdiv(M, tm),),
        in_specs=[pl.BlockSpec((tm, E), lambda i: (i, 0)),
                  pl.BlockSpec((1, E), lambda i: (0, 0)),
                  pl.BlockSpec((1, E), lambda i: (0, 0)),
                  pl.BlockSpec((E, H), lambda i: (0, 0)),
                  pl.BlockSpec((1, H), lambda i: (0, 0)),
                  pl.BlockSpec((H, E), lambda i: (0, 0)),
                  pl.BlockSpec((1, E), lambda i: (0, 0))],
        out_specs=pl.BlockSpec((tm, E), lambda i: (i, 0)),
        compiler_params=_compiler_params(("parallel",)),
        cost_estimate=pl.CostEstimate(
            flops=4 * M * E * H, transcendentals=M * H,
            bytes_accessed=int((2 * M * E + 2 * E * H + H + 3 * E) * itemsize)),
    )(x2, ln_scale.reshape(1, E), ln_shift.reshape(1, E), w1,
      b1.reshape(1, H), w2, b2.reshape(1, E))


# ------------------------------ Causal attention ------------------------------
def _attn_kernel(qkv_ref, o_ref, *, n_heads, scale):
    T, E3 = qkv_ref.shape
    E = E3 // 3
    D = E // n_heads
    qkv = qkv_ref[...]                                        # (T, 3E), native dtype
    row = jax.lax.broadcasted_iota(jnp.int32, (T, T), 0)
    col = jax.lax.broadcasted_iota(jnp.int32, (T, T), 1)
    causal = col <= row
    ctx = []
    for h in range(n_heads):                                  # static unroll over heads
        q = qkv[:, h * D:(h + 1) * D]
        k = qkv[:, E + h * D:E + (h + 1) * D]
        v = qkv[:, 2 * E + h * D:2 * E + (h + 1) * D]
        qs = (q * scale).astype(q.dtype)                      # fold 1/sqrt(D) into q (TxD mults)
        s = jax.lax.dot_general(qs, k, (((1,), (1,)), ((), ())),
                                preferred_element_type=jnp.float32)   # q @ k.T on the MXU
        s = jnp.where(causal, s, -1e30)                       # causal mask
        m = jnp.max(s, axis=-1, keepdims=True)
        p = jnp.exp(s - m)
        inv = pl.reciprocal(jnp.sum(p, axis=-1, keepdims=True), approx=True)   # EUP slot
        p = p * inv                                           # attn dropout: eval identity
        ctx.append(jnp.dot(p.astype(v.dtype), v, preferred_element_type=jnp.float32))
    o_ref[...] = jnp.concatenate(ctx, axis=-1).astype(o_ref.dtype)   # lane-dense (T, E)


def attention_pallas(qkv, n_heads):
    # qkv: (B, T, 3E) fused Q|K|V; grid over batch, full T per block.
    # TODO(synk): for long contexts add an online-softmax (flash) KV/query grid so the TxT
    #             scores never materialize (v7x 64 MiB VMEM).
    B, T, E3 = qkv.shape
    E = E3 // 3
    D = E // n_heads
    return pl.pallas_call(
        functools.partial(_attn_kernel, n_heads=n_heads, scale=1.0 / math.sqrt(D)),
        out_shape=jax.ShapeDtypeStruct((B, T, E), qkv.dtype),
        grid=(B,),
        in_specs=[pl.BlockSpec((pl.Squeezed(), T, E3), lambda b: (b, 0, 0))],
        out_specs=pl.BlockSpec((pl.Squeezed(), T, E), lambda b: (b, 0, 0)),
        compiler_params=_compiler_params(("parallel",)),
        cost_estimate=pl.CostEstimate(
            flops=4 * B * n_heads * T * T * D,
            transcendentals=B * n_heads * T * T,
            bytes_accessed=int((B * T * E3 + B * T * E) * qkv.dtype.itemsize)),
    )(qkv)


# ------------------------------- GPT forward --------------------------------
def gpt_forward_pallas(params, in_idx, cfg):
    B, T = in_idx.shape
    if T > cfg["context_length"]:
        raise ValueError("sequence length exceeds context length")
    E = cfg["emb_dim"]
    n_heads = cfg["n_heads"]
    tok = jnp.take(params["tok_emb"], in_idx, axis=0)                    # (B, T, E)
    x = tok + params["pos_emb"][:T][None, :, :]                          # drop_emb: identity
    x2 = x.reshape(B * T, E)
    for blk in params["blocks"]:
        # LN1 fused into the fused-QKV projection (qkv_bias=False in this config).
        qkv = linear_pallas(x2, blk["wqkv"], bias=blk.get("bqkv"),
                            ln=(blk["ln1_scale"], blk["ln1_shift"]))     # (M, 3E)
        ctx = attention_pallas(qkv.reshape(B, T, 3 * E), n_heads)        # (B, T, E)
        # out-projection with the residual (pre-LN1 x) fused into the store; drop_shortcut: id.
        x2 = linear_pallas(ctx.reshape(B * T, E), blk["wo"], bias=blk["bo"], residual=x2)
        # LN2 + Linear + GELU + Linear + residual, all in one kernel.
        x2 = feedforward_pallas(x2, blk["ln2_scale"], blk["ln2_shift"],
                                blk["w1"], blk["b1"], blk["w2"], blk["b2"])
    # Final LayerNorm fused into the lm head (bias=False), lane-tiled over the vocab axis.
    logits = linear_pallas(x2, params["out_w"], bias=None,
                           ln=(params["fn_scale"], params["fn_shift"]))
    return logits.reshape(B, T, cfg["vocab_size"])


# ----------------------------- Pure-JAX reference -----------------------------
def _gelu_ref(h):
    return 0.5 * h * (1.0 + jnp.tanh(_GELU_C * (h + 0.044715 * h ** 3)))


def _layernorm_ref(x, scale, shift, eps=1e-5):
    mean = jnp.mean(x, axis=-1, keepdims=True)
    var = jnp.mean((x - mean) ** 2, axis=-1, keepdims=True)
    return scale * (x - mean) / jnp.sqrt(var + eps) + shift


def gpt_forward_ref(params, in_idx, cfg):
    n_heads = cfg["n_heads"]
    tok = jnp.take(params["tok_emb"], in_idx, axis=0)
    pos = params["pos_emb"][: in_idx.shape[1]]
    x = tok + pos[None]
    B, T, E = x.shape
    D = E // n_heads
    for blk in params["blocks"]:
        xn = _layernorm_ref(x, blk["ln1_scale"], blk["ln1_shift"])
        qkv = xn @ blk["wqkv"]
        q, k, v = jnp.split(qkv, 3, axis=-1)
        q = q.reshape(B, T, n_heads, D).transpose(0, 2, 1, 3)
        k = k.reshape(B, T, n_heads, D).transpose(0, 2, 1, 3)
        v = v.reshape(B, T, n_heads, D).transpose(0, 2, 1, 3)
        s = jnp.einsum("bhqd,bhkd->bhqk", q, k) / math.sqrt(D)
        mask = jnp.triu(jnp.ones((T, T), dtype=bool), k=1)
        s = jnp.where(mask[None, None], -jnp.inf, s)
        w = jax.nn.softmax(s, axis=-1)
        ctx = jnp.einsum("bhqk,bhkd->bhqd", w, v).transpose(0, 2, 1, 3).reshape(B, T, E)
        x = x + (ctx @ blk["wo"] + blk["bo"])
        xn = _layernorm_ref(x, blk["ln2_scale"], blk["ln2_shift"])
        h = xn @ blk["w1"] + blk["b1"]
        x = x + (_gelu_ref(h) @ blk["w2"] + blk["b2"])
    x = _layernorm_ref(x, params["fn_scale"], params["fn_shift"])
    return x @ params["out_w"]                     # out_head: bias=False


# -------------------------------- Param init ---------------------------------
def init_params(key, cfg):
    E = cfg["emb_dim"]; H = 4 * E; V = cfg["vocab_size"]; C = cfg["context_length"]
    n_layers = cfg["n_layers"]
    keys = jax.random.split(key, 3 + n_layers)
    be = 1.0 / math.sqrt(E)
    bh = 1.0 / math.sqrt(H)
    params = {
        "tok_emb": 0.02 * jax.random.normal(keys[0], (V, E), jnp.float32),
        "pos_emb": 0.02 * jax.random.normal(keys[1], (C, E), jnp.float32),
        "fn_scale": jnp.ones((E,), jnp.float32),
        "fn_shift": jnp.zeros((E,), jnp.float32),
        "out_w": jax.random.uniform(keys[2], (E, V), jnp.float32, -be, be),
        "blocks": [],
    }
    for l in range(n_layers):
        lk = jax.random.split(keys[3 + l], 7)
        params["blocks"].append({
            # Fused W_q|W_k|W_v (qkv_bias=False, so no fused bias).
            "wqkv": jax.random.uniform(lk[0], (E, 3 * E), jnp.float32, -be, be),
            "wo": jax.random.uniform(lk[1], (E, E), jnp.float32, -be, be),
            "bo": jax.random.uniform(lk[2], (E,), jnp.float32, -be, be),
            "ln1_scale": jnp.ones((E,), jnp.float32), "ln1_shift": jnp.zeros((E,), jnp.float32),
            "ln2_scale": jnp.ones((E,), jnp.float32), "ln2_shift": jnp.zeros((E,), jnp.float32),
            "w1": jax.random.uniform(lk[3], (E, H), jnp.float32, -be, be),
            "b1": jax.random.uniform(lk[4], (H,), jnp.float32, -be, be),
            "w2": jax.random.uniform(lk[5], (H, E), jnp.float32, -bh, bh),
            "b2": jax.random.uniform(lk[6], (E,), jnp.float32, -bh, bh),
        })
    return params


if __name__ == "__main__":
    cfg = dict(vocab_size=128, context_length=16, emb_dim=32, n_heads=4,
               n_layers=2, drop_rate=0.0, qkv_bias=False)
    B, T = 2, 8

    key = jax.random.PRNGKey(0)
    kp, kidx = jax.random.split(key)
    params = init_params(kp, cfg)
    in_idx = jax.random.randint(kidx, (B, T), 0, cfg["vocab_size"], dtype=jnp.int32)

    logits = gpt_forward_pallas(params, in_idx, cfg)
    logits = jax.block_until_ready(logits)

    ref = gpt_forward_ref(params, in_idx, cfg)
    assert logits.shape == (B, T, cfg["vocab_size"])
    max_err = float(jnp.max(jnp.abs(logits - ref)))
    assert jnp.allclose(logits, ref, atol=5e-3, rtol=5e-3), f"mismatch vs reference, max_err={max_err}"

    print("KERNEL_OK")
</pallas_src>

<mosaic_0001>
module attributes {stable_mosaic.version = 11 : i64} {
  func.func @_linear_kernel(%arg0: i32, %arg1: i32, %arg2: memref<16x32xf32, #tpu.memory_space<vmem>>, %arg3: memref<1x32xf32, #tpu.memory_space<vmem>>, %arg4: memref<1x32xf32, #tpu.memory_space<vmem>>, %arg5: memref<32x96xf32, #tpu.memory_space<vmem>>, %arg6: memref<16x96xf32, #tpu.memory_space<vmem>>) attributes {dimension_semantics = [#tpu.dimension_semantics<parallel>, #tpu.dimension_semantics<parallel>], iteration_bounds = array<i64: 1, 1>, scalar_prefetch = 0 : i64, scratch_operands = 0 : i64, tpu.core_type = #tpu.core_type<tc>, window_params = [{transform_indices = @transform_0, window_bounds = array<i64: 16, 32>}, {pipeline_mode = #tpu.pipeline_mode<synchronous>, transform_indices = @transform_1, window_bounds = array<i64: 1, 32>}, {pipeline_mode = #tpu.pipeline_mode<synchronous>, transform_indices = @transform_2, window_bounds = array<i64: 1, 32>}, {transform_indices = @transform_3, window_bounds = array<i64: 32, 96>}, {transform_indices = @transform_4, window_bounds = array<i64: 16, 96>}]} {
    %c0 = arith.constant 0 : index
    %c0_0 = arith.constant 0 : index
    %0 = vector.load %arg2[%c0, %c0_0] : memref<16x32xf32, #tpu.memory_space<vmem>>, vector<16x32xf32>
    %c0_1 = arith.constant 0 : index
    %c0_2 = arith.constant 0 : index
    %1 = vector.load %arg3[%c0_1, %c0_2] : memref<1x32xf32, #tpu.memory_space<vmem>>, vector<1x32xf32>
    %c0_3 = arith.constant 0 : index
    %c0_4 = arith.constant 0 : index
    %2 = vector.load %arg4[%c0_3, %c0_4] : memref<1x32xf32, #tpu.memory_space<vmem>>, vector<1x32xf32>
    %cst = arith.constant dense<0.000000e+00> : vector<16xf32>
    %3 = vector.multi_reduction <add>, %0, %cst [1] : vector<16x32xf32> to vector<16xf32>
    %4 = vector.shape_cast %3 : vector<16xf32> to vector<16x1xf32>
    %cst_5 = arith.constant 3.200000e+01 : f32
    %5 = vector.broadcast %cst_5 : f32 to vector<16x1xf32>
    %6 = arith.divf %4, %5 : vector<16x1xf32>
    %7 = vector.broadcast %6 : vector<16x1xf32> to vector<16x32xf32>
    %8 = arith.subf %0, %7 : vector<16x32xf32>
    %9 = arith.mulf %8, %8 : vector<16x32xf32>
    %cst_6 = arith.constant dense<0.000000e+00> : vector<16xf32>
    %10 = vector.multi_reduction <add>, %9, %cst_6 [1] : vector<16x32xf32> to vector<16xf32>
    %11 = vector.shape_cast %10 : vector<16xf32> to vector<16x1xf32>
    %cst_7 = arith.constant 3.200000e+01 : f32
    %12 = vector.broadcast %cst_7 : f32 to vector<16x1xf32>
    %13 = arith.divf %11, %12 : vector<16x1xf32>
    %14 = vector.broadcast %6 : vector<16x1xf32> to vector<16x32xf32>
    %15 = arith.subf %0, %14 : vector<16x32xf32>
    %cst_8 = arith.constant 9.99999974E-6 : f32
    %16 = vector.broadcast %cst_8 : f32 to vector<16x1xf32>
    %17 = arith.addf %13, %16 : vector<16x1xf32>
    %18 = math.rsqrt %17 : vector<16x1xf32>
    %19 = vector.broadcast %18 : vector<16x1xf32> to vector<16x32xf32>
    %20 = arith.mulf %15, %19 : vector<16x32xf32>
    %21 = vector.broadcast %1 : vector<1x32xf32> to vector<16x32xf32>
    %22 = arith.mulf %20, %21 : vector<16x32xf32>
    %23 = vector.broadcast %2 : vector<1x32xf32> to vector<16x32xf32>
    %24 = arith.addf %22, %23 : vector<16x32xf32>
    %c0_9 = arith.constant 0 : index
    %c0_10 = arith.constant 0 : index
    %25 = vector.load %arg5[%c0_9, %c0_10] : memref<32x96xf32, #tpu.memory_space<vmem>>, vector<32x96xf32>
    %cst_11 = arith.constant dense<0.000000e+00> : vector<16x96xf32>
    %26 = tpu.matmul %24, %25, %cst_11 {dimension_numbers = #tpu.dot_dimension_numbers<[1], [0], [0], [1], [0, 0, 1, 1], [], []>} : vector<16x32xf32>, vector<32x96xf32>, vector<16x96xf32> -> vector<16x96xf32>
    %c0_12 = arith.constant 0 : index
    %c0_13 = arith.constant 0 : index
    %27 = vector.load %arg6[%c0_12, %c0_13] : memref<16x96xf32, #tpu.memory_space<vmem>>, vector<16x96xf32>
    tpu.vector_store %arg6[%c0_12, %c0_13], %26 {strides = array<i32>} : memref<16x96xf32, #tpu.memory_space<vmem>>, vector<16x96xf32>,
    return
  }
  func.func @transform_0(%arg0: i32, %arg1: i32) -> (i32, i32) {
    %c0_i32 = arith.constant 0 : i32
    %c0_i32_0 = arith.constant 0 : i32
    return %arg0, %c0_i32 : i32, i32
  }
  func.func @transform_1(%arg0: i32, %arg1: i32) -> (i32, i32) {
    %c0_i32 = arith.constant 0 : i32
    %c0_i32_0 = arith.constant 0 : i32
    %c0_i32_1 = arith.constant 0 : i32
    return %c0_i32, %c0_i32_0 : i32, i32
  }
  func.func @transform_2(%arg0: i32, %arg1: i32) -> (i32, i32) {
    %c0_i32 = arith.constant 0 : i32
    %c0_i32_0 = arith.constant 0 : i32
    %c0_i32_1 = arith.constant 0 : i32
    return %c0_i32, %c0_i32_0 : i32, i32
  }
  func.func @transform_3(%arg0: i32, %arg1: i32) -> (i32, i32) {
    %c0_i32 = arith.constant 0 : i32
    %c0_i32_0 = arith.constant 0 : i32
    return %c0_i32, %arg1 : i32, i32
  }
  func.func @transform_4(%arg0: i32, %arg1: i32) -> (i32, i32) {
    %c0_i32 = arith.constant 0 : i32
    return %arg0, %arg1 : i32, i32
  }
}

</mosaic_0001>

<bundles_post_ra>
// kernel: tpu_custom_call.1
= control target key start
LH: loop header
LB: loop body
LE: loop exit
PB: predicated region body
PF: predicated region fallthrough
CT: control target
= control target key end

     0   :  { %9 = vsyncpa [#allocation3], 0  ;;  %s370_s0 = inlined_call_operand.hbm [shape: f32[16,32], index: 0, kind: input, shape index: {}]   ;;  %s371_s1 = inlined_call_operand.hbm [shape: f32[1,32], index: 1, kind: input, shape index: {}]   ;;  %s372_s2 = inlined_call_operand.vmem [shape: f32[1,32], index: 2, kind: input, shape index: {}]   ;;  %s373_s3 = inlined_call_operand.hbm [shape: f32[32,96], index: 3, kind: input, shape index: {}]   ;;  %s374_s4 = inlined_call_operand.hbm [shape: f32[16,96], index: 4, kind: output, shape index: {}]  }
   0x1   :  { %10 = vsyncpa [#allocation6], 0  ;;  %s30_s17 = sshll.u32 %s371_s1, 4  ;;  %s31_s17 = int_to_ptr.hbm [resolvable:$true] %s30_s17 }
   0x2   :  { %11 = vsyncpa [#allocation4], 0  ;;  %s308_s18 = smov [#allocation5]   ;;  %s16_s22 = sshll.u32 %s370_s0, 4  ;;  %s17_s22 = int_to_ptr.hbm [resolvable:$true] %s16_s22 }
   0x3   :  { %s32_s19 = sshll.u32 %s308_s18, 4  ;;  %s309_s23 = smov [#allocation2]   ;;  %s33_s19 = int_to_ptr.vmem [resolvable:$true] %s32_s19 }
   0x4   :  { %35 = dma.hbm_to_vmem [thread:$0]  %s31_s17, 16, %s33_s19, [#allocation6]  }
   0x5   :  { %s18_s24 = sshll.u32 %s309_s23, 4  ;;  %s310_s25 = smov 128   ;;  %s19_s24 = int_to_ptr.vmem [resolvable:$true] %s18_s24 }
   0x6   :  { %s311_s26 = smov 8   ;;  %s42_s28 = sshll.u32 %s373_s3, 4  ;;  %s43_s28 = int_to_ptr.hbm [resolvable:$true] %s42_s28 }
   0x7   :  { %24 = dma.hbm_to_vmem [thread:$0]  %s17_s22, 256, %s19_s24, [#allocation3], %s310_s25, %s310_s25, %s311_s26  }
   0x8   :  { %s312_s29 = smov [#allocation7]  }
   0x9   :  { %s44_s30 = sshll.u32 %s312_s29, 4  ;;  %s45_s30 = int_to_ptr.vmem [resolvable:$true] %s44_s30 }
   0xa   :  { %50 = dma.hbm_to_vmem [thread:$0]  %s43_s28, 512, %s45_s30, [#allocation6], %s310_s25, %s310_s25, %s311_s26  }
   0xb   :  { %302 = dma.done.wait [#allocation3], 256  }
   0xc   :  { %303 = vsyncadd [#allocation3], 4294967040 }
   0xd   :  { %304 = dma.done.wait [#allocation6], 528  }
   0xe   :  { %305 = vsyncadd [#allocation6], 4294966768  ;;  %vm67_vm0 = vcmask 261120   ;;  %v63_v0 = vld [vmem:[#allocation2] sm:$0xff]  ;;  %v64_v2 = vld [vmem:[#allocation2 + $0x8] sm:$0xff]  ;;  %v313_v4 = vmov 32.0  }
   0xf   :  { %v68_v1 = vsel %vm67_vm0, %v63_v0, 0.0  ;;  %v71_v3 = vsel %vm67_vm0, %v64_v2, 0.0  ;;  %200 = vrcp.f32 %v313_v4  ;;  %v132_v21 = vld [vmem:[#allocation7 + $0x18] sm:$0xff]  ;;  %v131_v22 = vld [vmem:[#allocation7 + $0x10] sm:$0xff]  ;;  %v130_v23 = vld [vmem:[#allocation7 + $0x8] sm:$0xff]  ;;  %vm162_vm8 = vcmask 785408  }
  0x10   :  { %69 = vadd.xlane.f32.xlu0 %v68_v1  ;;  %151 = vmatpush.msra.mxu0 %v132_v21  ;;  %v129_v24 = vld [vmem:[#allocation7] sm:$0xff]  ;;  %v198_v39 = vld [vmem:[#allocation5] ss:$0 sm:$0xff]  ;;  %v199_v43 = vld [vmem:[%s372_s2] ss:$0 sm:$0xff]  ;;  %s314_s2 = smov [#allocation8]  }
  0x11   :  { %187 = vmatpush.msra.mxu1 %v132_v21  ;;  %s169_s5 = sshll.u32 %s314_s2, 4  ;;  %s171_s8 = sshll.u32 %s374_s4, 4  ;;  %s170_s5 = int_to_ptr.vmem [resolvable:$true] %s169_s5  ;;  %s172_s8 = int_to_ptr.hbm [resolvable:$true] %s171_s8 }
  0x12   :  { %152 = vmatpush.msra.mxu0 %v131_v22 }
  0x13   :  { %188 = vmatpush.msra.mxu1 %v131_v22 }
  0x14   :  { %153 = vmatpush.msra.mxu0 %v130_v23 }
  0x15   :  { %v201_v5 = vpop.eup %200  ;;  %189 = vmatpush.msra.mxu1 %v130_v23 }
  0x16   :  { %v75_v6 = vmul.f32 32.0, %v201_v5  ;;  %vm79_vm1 = vweird.f32 %v201_v5  ;;  %154 = vmatpush.msra.mxu0 %v129_v24 }
  0x17   :  { %190 = vmatpush.msra.mxu1 %v129_v24 }
  0x18   :  { %72 = vadd.xlane.f32.xlu0 %v71_v3  ;;  %v76_v7 = vsub.f32 1.0, %v75_v6 }
  0x1a   :  { %v77_v8 = vmul.f32 %v201_v5, %v76_v7 }
  0x1c   :  { %v78_v9 = vadd.f32 %v201_v5, %v77_v8 }
  0x1e   :  { %v80_v10 = vsel %vm79_vm1, %v201_v5, %v78_v9 }
  0x83   :  { %v70_v11 = vpop.xlane.xlu0 %69 }
  0x84   :  { %v81_v12 = vmul.f32 %v80_v10, %v70_v11 }
  0x86   :  { %v83_v13 = vsub.f32 %v63_v0, %v81_v12 }
  0x88   :  { %v85_v14 = vmul.f32 %v83_v13, %v83_v13 }
  0x8a   :  { %v87_v15 = vsel %vm67_vm0, %v85_v14, 0.0 }
  0x8b   :  { %88 = vadd.xlane.f32.xlu1 %v87_v15  ;;  %v73_v16 = vpop.xlane.xlu0 %72 }
  0x8c   :  { %v82_v17 = vmul.f32 %v80_v10, %v73_v16 }
  0x8e   :  { %v84_v18 = vsub.f32 %v64_v2, %v82_v17 }
  0x90   :  { %v86_v19 = vmul.f32 %v84_v18, %v84_v18 }
  0x92   :  { %v90_v20 = vsel %vm67_vm0, %v86_v19, 0.0 }
  0x93   :  { %91 = vadd.xlane.f32.xlu1 %v90_v20 }
  0xfe   :  { %v89_v25 = vpop.xlane.xlu1 %88 }
  0xff   :  { %v93_v26 = vmul.f32 %v89_v25, %v80_v10 }
 0x101   :  { %v95_v27 = vadd.f32 1e-05, %v93_v26 }
 0x103   :  { %202 = vrsqrt.f32 %v95_v27  ;;  %vm103_vm3 = vweird.f32 %v95_v27 }
 0x106   :  { %v92_v28 = vpop.xlane.xlu1 %91 }
 0x107   :  { %v94_v29 = vmul.f32 %v92_v28, %v80_v10 }
 0x109   :  { %v203_v30 = vpop.eup %202  ;;  %v96_v31 = vadd.f32 1e-05, %v94_v29 }
 0x10a   :  { %v98_v32 = vmul.f32 %v203_v30, %v95_v27  ;;  %vm104_vm2 = vweird.f32 %v203_v30 }
 0x10b   :  { %204 = vrsqrt.f32 %v96_v31  ;;  %vm105_vm4 = vmor %vm103_vm3, %vm104_vm2  ;;  %vm113_vm6 = vweird.f32 %v96_v31 }
 0x10c   :  { %v99_v33 = vmul.f32 %v203_v30, %v98_v32 }
 0x10e   :  { %v100_v34 = vmul.f32 0.5, %v99_v33 }
 0x110   :  { %v101_v35 = vsub.f32 1.5, %v100_v34 }
 0x111   :  { %v205_v36 = vpop.eup %204 }
 0x112   :  { %v102_v37 = vmul.f32 %v203_v30, %v101_v35  ;;  %v108_v38 = vmul.f32 %v205_v36, %v96_v31  ;;  %vm114_vm5 = vweird.f32 %v205_v36 }
 0x113   :  { %vm115_vm7 = vmor %vm113_vm6, %vm114_vm5 }
 0x114   :  { %v106_v40 = vsel %vm105_vm4, %v203_v30, %v102_v37  ;;  %v109_v41 = vmul.f32 %v205_v36, %v108_v38 }
 0x115   :  { %v117_v42 = vmul.f32 %v106_v40, %v83_v13 }
 0x116   :  { %v110_v44 = vmul.f32 0.5, %v109_v41 }
 0x117   :  { %v122_v45 = vmul.f32 %v198_v39, %v117_v42 }
 0x118   :  { %v111_v46 = vsub.f32 1.5, %v110_v44 }
 0x119   :  { %v127_v47 = vadd.f32 %v199_v43, %v122_v45 }
 0x11a   :  { %v112_v48 = vmul.f32 %v205_v36, %v111_v46 }
 0x11b   :  { %185 = vmatmul.msk.f32.vlgmr.msra.gmra.mxu0 %vm67_vm0, %v127_v47 }
 0x11c   :  { %v116_v49 = vsel %vm115_vm7, %v205_v36, %v112_v48 }
 0x11d   :  { %v118_v50 = vmul.f32 %v116_v49, %v84_v18 }
 0x11f   :  { %v123_v51 = vmul.f32 %v198_v39, %v118_v50 }
 0x121   :  { %v128_v52 = vadd.f32 %v199_v43, %v123_v51 }
 0x123   :  { %186 = vmatmul.msk.f32.vlgmr.msra.gmra.mxu1 %vm67_vm0, %v128_v52 }
 0x198   :  { %v156_v53 = vpop.f32.mrf.mxu0 }
 0x199   :  { %163 = vst.msk [vmem:[#allocation8] sm:$0xff] %vm162_vm8, %v156_v53 }
 0x1a0   :  { %v159_v54 = vpop.f32.mrf.mxu1 }
 0x1a1   :  { %164 = vst.msk [vmem:[#allocation8 + $0x8] sm:$0xff] %vm162_vm8, %v159_v54 }
 0x1a2   :  { %177 = dma.vmem_to_hbm [thread:$0]  %s170_s5, 256, %s172_s8, [#allocation4], %s310_s25, %s310_s25, %s311_s26  }
 0x1a3   :  { %306 = dma.done.wait [#allocation4], 256  }
 0x1a4   :  { %307 = vsyncadd [#allocation4], 4294967040 }
 0x1a5   :  { %182 = vsyncpa [#allocation3], 1 }
 0x1a6   :  { %183 = vsyncpa [#allocation6], 1 }
 0x1a7   :  { %184 = vsyncpa [#allocation4], 1 }

</bundles_post_ra>
